<compile_context>
chip_gen: v7x
topology: tpu7x:2x2x1
jax: 0.10.0
libtpu: 0.0.40
codegen_flags: <defaults>
</compile_context>

<pallas_src>
import functools

import jax
import jax.numpy as jnp
from jax.experimental import pallas as pl
from jax.experimental.pallas import tpu as pltpu


# ------------------------------------------------------------------ helpers --
def _round_up(x, m):
    return (x + m - 1) // m * m


def _cdiv(a, b):
    return (a + b - 1) // b


def _largest_divisor_leq(n, cap):
    cap = max(1, min(n, cap))
    for d in range(cap, 0, -1):
        if n % d == 0:
            return d
    return 1


def _vmem_budgets():
    """(per-step tile budget, scoped vmem_limit_bytes) chosen per generation."""
    cap = 64 * 1024 * 1024
    try:
        info = pltpu.get_tpu_info()
        cap = getattr(info, "vmem_capacity_bytes", cap)
    except Exception:
        pass
    if cap >= 100 * 1024 * 1024:          # v5e / v6e: 128 MiB physical VMEM
        return 24 * 1024 * 1024, 64 * 1024 * 1024
    return 8 * 1024 * 1024, 32 * 1024 * 1024   # v7x: 64 MiB physical VMEM


# ------------------------------------------------------------------ kernels --
def _make_fused_kernel(n_batch, m_total, eps):
    """Whole problem resident in VMEM: conv + batch stats + BN + ReLU."""

    def kernel(x_ref, w_ref, g_ref, bt_ref, o_ref):
        # x_ref: (N, Cin, S)  w_ref: (Cout, Cin)  g/bt: (Cout, 1)  o: (N, Cout, S)
        w = w_ref[...]
        cout = w.shape[0]
        zs = [jnp.dot(w, x_ref[b], preferred_element_type=jnp.float32)
              for b in range(n_batch)]                       # each (Cout, S) f32
        sum_z = jnp.zeros((cout, 1), jnp.float32)
        ssq_z = jnp.zeros((cout, 1), jnp.float32)
        for z in zs:
            sum_z = sum_z + jnp.sum(z, axis=1, keepdims=True)
            ssq_z = ssq_z + jnp.sum(z * z, axis=1, keepdims=True)
        mean = sum_z / m_total
        # f32 accumulation + clamp; E[z^2]-E[z]^2 cancellation is acceptable at
        # these M.  TODO(synk): Kahan/centered accumulation for very large M.
        var = jnp.maximum(ssq_z / m_total - mean * mean, 0.0)
        inv_std = jax.lax.rsqrt(var + eps)
        scale = g_ref[...] * inv_std                          # (Cout, 1)
        shift = bt_ref[...] - mean * scale                    # conv bias cancels
        for b in range(n_batch):
            o_ref[b] = jnp.maximum(zs[b] * scale + shift, 0.0).astype(o_ref.dtype)

    return kernel


def _make_stats_kernel(b_blk, s_total, ragged, write_z):
    """Pass 1: z = W @ x per tile; accumulate per-channel sum / sumsq.

    Optionally also writes z to HBM (channel-reducing convs).  The last spatial
    tile may be ragged: out-of-range columns are masked out of the statistics
    (their z values are garbage from the partial input block and must not leak).
    """

    def kernel(x_ref, w_ref, *out_refs):
        if write_z:
            sum_ref, ssq_ref, z_ref = out_refs
        else:
            sum_ref, ssq_ref = out_refs

        @pl.when(pl.program_id(1) == 0)
        def _():
            sum_ref[...] = jnp.zeros_like(sum_ref)
            ssq_ref[...] = jnp.zeros_like(ssq_ref)

        w = w_ref[...]
        cout = w.shape[0]
        ts = x_ref.shape[-1]
        if ragged:
            col = jax.lax.broadcasted_iota(jnp.int32, (1, ts), 1)
            valid = (pl.program_id(1) * ts + col) < s_total   # (1, ts)

        part_s = jnp.zeros((cout, 1), jnp.float32)
        part_q = jnp.zeros((cout, 1), jnp.float32)
        for b in range(b_blk):
            z = jnp.dot(w, x_ref[b], preferred_element_type=jnp.float32)  # (Cout, ts)
            if write_z:
                z_ref[b] = z.astype(z_ref.dtype)
            zm = jnp.where(valid, z, 0.0) if ragged else z
            part_s = part_s + jnp.sum(zm, axis=1, keepdims=True)
            part_q = part_q + jnp.sum(zm * zm, axis=1, keepdims=True)
        sum_ref[...] += part_s[None]
        ssq_ref[...] += part_q[None]

    return kernel


def _make_recompute_kernel(b_blk):
    """Pass 2 (recompute): y = relu(W_folded @ x + c)."""

    def kernel(x_ref, w_ref, c_ref, o_ref):
        w = w_ref[...]
        c = c_ref[...]
        for b in range(b_blk):
            z = jnp.dot(w, x_ref[b], preferred_element_type=jnp.float32)
            o_ref[b] = jnp.maximum(z + c, 0.0).astype(o_ref.dtype)

    return kernel


def _make_affine_kernel(b_blk):
    """Pass 2 (saved z): y = relu(scale * z + c)."""

    def kernel(z_ref, sc_ref, c_ref, o_ref):
        sc = sc_ref[...]
        c = c_ref[...]
        for b in range(b_blk):
            o_ref[b] = jnp.maximum(z_ref[b] * sc + c, 0.0).astype(o_ref.dtype)

    return kernel


# ------------------------------------------------------------------ wrapper --
def two_conv_forward(x_nchw, weight, bias, gamma, beta, eps=1e-5,
                     spatial_tile=None, max_fused_bytes=None):
    """Forward pass of twoConv (Conv2d k=1 + BatchNorm2d(train) + ReLU).

    x_nchw : (N, Cin, H, W)
    weight : (Cout, Cin, 1, 1)   (PyTorch Conv2d weight layout)
    bias   : (Cout,)             (cancels exactly against the batch mean)
    gamma, beta : (Cout,)        (BatchNorm2d affine params)
    returns: (N, Cout, H, W), dtype of x.
    """
    N, Cin, H, W = x_nchw.shape
    Cout = weight.shape[0]
    S = H * W
    M_total = N * S

    in_dt = x_nchw.dtype
    out_dt = in_dt
    in_bytes = jnp.dtype(in_dt).itemsize
    out_bytes = jnp.dtype(out_dt).itemsize

    # Contiguous reshape only -- no NCHW<->NHWC transpose, no dtype upcast.
    x_flat = x_nchw.reshape(N, Cin, S)
    w_f32 = weight.reshape(Cout, Cin).astype(jnp.float32)
    w_k = w_f32.astype(in_dt)
    g_col = gamma.reshape(Cout, 1).astype(jnp.float32)
    beta_col = beta.reshape(Cout, 1).astype(jnp.float32)
    del bias  # conv bias cancels against the training-mode batch mean

    tile_budget, vmem_limit = _vmem_budgets()

    # ---------------- fused single-pass path for small problems ---------------
    fused_bytes = (N * Cin * S * in_bytes        # x
                   + N * Cout * S * 4            # z held on-chip in f32
                   + N * Cout * S * out_bytes)   # out
    if max_fused_bytes is None:
        max_fused_bytes = min(4 * 1024 * 1024, tile_budget)
    if fused_bytes <= max_fused_bytes and N <= 16 and spatial_tile is None:
        out_flat = pl.pallas_call(
            _make_fused_kernel(N, float(M_total), float(eps)),
            out_shape=jax.ShapeDtypeStruct((N, Cout, S), out_dt),
            grid_spec=pltpu.PrefetchScalarGridSpec(
                num_scalar_prefetch=0,
                grid=(1,),
                in_specs=[
                    pl.BlockSpec((N, Cin, S), lambda i: (0, 0, 0)),
                    pl.BlockSpec((Cout, Cin), lambda i: (0, 0)),
                    pl.BlockSpec((Cout, 1), lambda i: (0, 0)),
                    pl.BlockSpec((Cout, 1), lambda i: (0, 0)),
                ],
                out_specs=pl.BlockSpec((N, Cout, S), lambda i: (0, 0, 0)),
            ),
            compiler_params=pltpu.CompilerParams(
                dimension_semantics=("arbitrary",),
                vmem_limit_bytes=vmem_limit),
        )(x_flat, w_k, g_col, beta_col)
        return out_flat.reshape(N, Cout, H, W)

    # ---------------- spatial tile / batch block sizing (two-pass) ------------
    # Per-column cost is counted conservatively (x + f32 z + out, double buffered)
    # so both pass-1 (with optional z write) and pass-2 fit the budget.
    col_bytes = 2 * (Cin * in_bytes + Cout * 4 + Cout * out_bytes)
    if spatial_tile is None:
        ts_max = max(128, (tile_budget // col_bytes) // 128 * 128)
    else:
        ts_max = spatial_tile
    if S <= ts_max:
        ts, n_s, ragged = S, 1, False
    else:
        n_s = _cdiv(S, ts_max)
        ts = min(ts_max, _round_up(_cdiv(S, n_s), 128))   # balanced tiles
        n_s = _cdiv(S, ts)
        ragged = (S % ts) != 0
        if ts % 128 != 0:
            raise ValueError("spatial_tile must be a multiple of 128 when < H*W")

    per_batch_bytes = ts * col_bytes
    b_cap_vmem = max(1, tile_budget // per_batch_bytes)
    b_target = max(1, _cdiv(512 * 1024, max(1, ts * Cin * in_bytes)))
    B_blk = _largest_divisor_leq(N, min(b_cap_vmem, b_target, 16))
    n_bg = N // B_blk

    write_z = Cin >= 2 * Cout   # channel-reducing conv: cheaper to save z than re-read x

    # ---------------- pass 1: conv (no bias) + per-channel sum / sumsq --------
    stats_out_shapes = [
        jax.ShapeDtypeStruct((n_bg, Cout, 1), jnp.float32),
        jax.ShapeDtypeStruct((n_bg, Cout, 1), jnp.float32),
    ]
    stats_out_specs = [
        pl.BlockSpec((1, Cout, 1), lambda g, s: (g, 0, 0)),   # resident accumulator
        pl.BlockSpec((1, Cout, 1), lambda g, s: (g, 0, 0)),   # resident accumulator
    ]
    if write_z:
        stats_out_shapes.append(jax.ShapeDtypeStruct((N, Cout, S), jnp.float32))
        stats_out_specs.append(pl.BlockSpec((B_blk, Cout, ts), lambda g, s: (g, 0, s)))

    pass1 = pl.pallas_call(
        _make_stats_kernel(B_blk, S, ragged, write_z),
        out_shape=tuple(stats_out_shapes),
        grid_spec=pltpu.PrefetchScalarGridSpec(
            num_scalar_prefetch=0,
            grid=(n_bg, n_s),
            in_specs=[
                pl.BlockSpec((B_blk, Cin, ts), lambda g, s: (g, 0, s)),
                pl.BlockSpec((Cout, Cin), lambda g, s: (0, 0)),
            ],
            out_specs=tuple(stats_out_specs),
        ),
        compiler_params=pltpu.CompilerParams(
            dimension_semantics=("parallel", "arbitrary"),
            vmem_limit_bytes=vmem_limit),
    )(x_flat, w_k)
    if write_z:
        ch_sum, ch_ssq, z_saved = pass1
    else:
        ch_sum, ch_ssq = pass1

    # ---------------- glue: fold batch stats + BN affine into scale / shift ---
    sum_z = jnp.sum(ch_sum, axis=0)                       # (Cout, 1) cross-group reduce
    ssq_z = jnp.sum(ch_ssq, axis=0)
    mean_z = sum_z / M_total
    var = jnp.maximum(ssq_z / M_total - mean_z * mean_z, 0.0)
    inv_std = jax.lax.rsqrt(var + eps)
    scale = g_col * inv_std                               # (Cout, 1)
    c_shift = beta_col - mean_z * scale                   # conv bias already cancelled

    # ---------------- pass 2 ---------------------------------------------------
    if write_z:
        out_flat = pl.pallas_call(
            _make_affine_kernel(B_blk),
            out_shape=jax.ShapeDtypeStruct((N, Cout, S), out_dt),
            grid_spec=pltpu.PrefetchScalarGridSpec(
                num_scalar_prefetch=0,
                grid=(n_bg, n_s),
                in_specs=[
                    pl.BlockSpec((B_blk, Cout, ts), lambda g, s: (g, 0, s)),
                    pl.BlockSpec((Cout, 1), lambda g, s: (0, 0)),
                    pl.BlockSpec((Cout, 1), lambda g, s: (0, 0)),
                ],
                out_specs=pl.BlockSpec((B_blk, Cout, ts), lambda g, s: (g, 0, s)),
            ),
            compiler_params=pltpu.CompilerParams(
                dimension_semantics=("parallel", "parallel"),
                vmem_limit_bytes=vmem_limit),
        )(z_saved, scale, c_shift)
    else:
        w_folded = (scale * w_f32).astype(in_dt)          # (Cout, Cin)
        out_flat = pl.pallas_call(
            _make_recompute_kernel(B_blk),
            out_shape=jax.ShapeDtypeStruct((N, Cout, S), out_dt),
            grid_spec=pltpu.PrefetchScalarGridSpec(
                num_scalar_prefetch=0,
                grid=(n_bg, n_s),
                in_specs=[
                    pl.BlockSpec((B_blk, Cin, ts), lambda g, s: (g, 0, s)),
                    pl.BlockSpec((Cout, Cin), lambda g, s: (0, 0)),
                    pl.BlockSpec((Cout, 1), lambda g, s: (0, 0)),
                ],
                out_specs=pl.BlockSpec((B_blk, Cout, ts), lambda g, s: (g, 0, s)),
            ),
            compiler_params=pltpu.CompilerParams(
                dimension_semantics=("parallel", "parallel"),
                vmem_limit_bytes=vmem_limit),
        )(x_flat, w_folded, c_shift)

    # Already NCHW channel order and exact spatial extent: reshape is free.
    return out_flat.reshape(N, Cout, H, W)


# --------------------------------------------------------------- reference ---
def two_conv_reference(x_nchw, weight, bias, gamma, beta, eps=1e-5):
    N, Cin, H, W = x_nchw.shape
    Cout = weight.shape[0]
    w_mat = weight.reshape(Cout, Cin).astype(jnp.float32)
    x = x_nchw.astype(jnp.float32)
    y = jnp.einsum("nchw,oc->nohw", x, w_mat) + bias.reshape(1, Cout, 1, 1)
    mean = jnp.mean(y, axis=(0, 2, 3), keepdims=True)
    var = jnp.mean((y - mean) ** 2, axis=(0, 2, 3), keepdims=True)
    y = (y - mean) * jax.lax.rsqrt(var + eps)
    y = y * gamma.reshape(1, Cout, 1, 1) + beta.reshape(1, Cout, 1, 1)
    return jnp.maximum(y, 0.0)


# --------------------------------------------------------------------- main --
if __name__ == "__main__":
    # TODO(synk): BatchNorm2d's running_mean/running_var buffer update (a training
    # side effect, not part of the forward output) is not reproduced here.
    key = jax.random.PRNGKey(0)

    def make_inputs(k, N, Cin, Cout, H, W):
        kx, kw, kb, kg, kbeta = jax.random.split(k, 5)
        x = jax.random.normal(kx, (N, Cin, H, W), dtype=jnp.float32)
        weight = jax.random.normal(kw, (Cout, Cin, 1, 1), dtype=jnp.float32) * 0.5
        bias = jax.random.normal(kb, (Cout,), dtype=jnp.float32) * 0.1
        gamma = 1.0 + 0.1 * jax.random.normal(kg, (Cout,), dtype=jnp.float32)
        beta = 0.1 * jax.random.normal(kbeta, (Cout,), dtype=jnp.float32)
        return x, weight, bias, gamma, beta

    def check(out, args):
        ref = two_conv_reference(*args)
        assert out.shape == ref.shape
        assert jnp.allclose(out, ref, atol=1e-4, rtol=1e-4), "mismatch vs reference"

    k1, k2, k3 = jax.random.split(key, 3)

    # 1) Small problem -> fully-fused single-pass path.
    args1 = make_inputs(k1, N=2, Cin=4, Cout=8, H=16, W=16)
    fwd_fused = jax.jit(two_conv_forward)
    out1 = jax.block_until_ready(fwd_fused(*args1))
    check(out1, args1)

    # 2) Two-pass recompute path (Cin < 2*Cout), ragged last spatial tile.
    args2 = make_inputs(k2, N=2, Cin=4, Cout=8, H=20, W=20)     # S = 400
    fwd_two_pass = jax.jit(functools.partial(
        two_conv_forward, spatial_tile=128, max_fused_bytes=0))
    out2 = jax.block_until_ready(fwd_two_pass(*args2))
    check(out2, args2)

    # 3) Two-pass "save z" path (channel-reducing conv, Cin >= 2*Cout).
    args3 = make_inputs(k3, N=2, Cin=16, Cout=4, H=20, W=20)    # S = 400
    out3 = jax.block_until_ready(fwd_two_pass(*args3))
    check(out3, args3)

    print("KERNEL_OK")
</pallas_src>

<mosaic_0001>
module attributes {stable_mosaic.version = 11 : i64} {
  func.func @kernel(%arg0: i32, %arg1: memref<2x4x256xf32, #tpu.memory_space<vmem>>, %arg2: memref<8x4xf32, #tpu.memory_space<vmem>>, %arg3: memref<8x1xf32, #tpu.memory_space<vmem>>, %arg4: memref<8x1xf32, #tpu.memory_space<vmem>>, %arg5: memref<2x8x256xf32, #tpu.memory_space<vmem>>) attributes {dimension_semantics = [#tpu.dimension_semantics<arbitrary>], iteration_bounds = array<i64: 1>, scalar_prefetch = 0 : i64, scratch_operands = 0 : i64, tpu.core_type = #tpu.core_type<tc>, window_params = [{pipeline_mode = #tpu.pipeline_mode<synchronous>, transform_indices = @transform_0, window_bounds = array<i64: 2, 4, 256>}, {pipeline_mode = #tpu.pipeline_mode<synchronous>, transform_indices = @transform_1, window_bounds = array<i64: 8, 4>}, {pipeline_mode = #tpu.pipeline_mode<synchronous>, transform_indices = @transform_2, window_bounds = array<i64: 8, 1>}, {pipeline_mode = #tpu.pipeline_mode<synchronous>, transform_indices = @transform_3, window_bounds = array<i64: 8, 1>}, {pipeline_mode = #tpu.pipeline_mode<synchronous>, transform_indices = @transform_4, window_bounds = array<i64: 2, 8, 256>}]} {
    %c0 = arith.constant 0 : index
    %c0_0 = arith.constant 0 : index
    %0 = vector.load %arg2[%c0, %c0_0] : memref<8x4xf32, #tpu.memory_space<vmem>>, vector<8x4xf32>
    %c0_1 = arith.constant 0 : index
    %c0_2 = arith.constant 0 : index
    %c0_3 = arith.constant 0 : index
    %1 = vector.load %arg1[%c0_1, %c0_2, %c0_3] : memref<2x4x256xf32, #tpu.memory_space<vmem>>, vector<1x4x256xf32>
    %2 = vector.shape_cast %1 : vector<1x4x256xf32> to vector<4x256xf32>
    %cst = arith.constant dense<0.000000e+00> : vector<8x256xf32>
    %3 = tpu.matmul %0, %2, %cst {dimension_numbers = #tpu.dot_dimension_numbers<[1], [0], [0], [1], [0, 0, 1, 1], [], []>} : vector<8x4xf32>, vector<4x256xf32>, vector<8x256xf32> -> vector<8x256xf32>
    %c1 = arith.constant 1 : index
    %c0_4 = arith.constant 0 : index
    %c0_5 = arith.constant 0 : index
    %4 = vector.load %arg1[%c1, %c0_4, %c0_5] : memref<2x4x256xf32, #tpu.memory_space<vmem>>, vector<1x4x256xf32>
    %5 = vector.shape_cast %4 : vector<1x4x256xf32> to vector<4x256xf32>
    %cst_6 = arith.constant dense<0.000000e+00> : vector<8x256xf32>
    %6 = tpu.matmul %0, %5, %cst_6 {dimension_numbers = #tpu.dot_dimension_numbers<[1], [0], [0], [1], [0, 0, 1, 1], [], []>} : vector<8x4xf32>, vector<4x256xf32>, vector<8x256xf32> -> vector<8x256xf32>
    %cst_7 = arith.constant 0.000000e+00 : f32
    %7 = vector.broadcast %cst_7 : f32 to vector<8x1xf32>
    %cst_8 = arith.constant 0.000000e+00 : f32
    %8 = vector.broadcast %cst_8 : f32 to vector<8x1xf32>
    %cst_9 = arith.constant dense<0.000000e+00> : vector<8xf32>
    %9 = vector.multi_reduction <add>, %3, %cst_9 [1] : vector<8x256xf32> to vector<8xf32>
    %10 = vector.shape_cast %9 : vector<8xf32> to vector<8x1xf32>
    %11 = arith.addf %7, %10 : vector<8x1xf32>
    %12 = arith.mulf %3, %3 : vector<8x256xf32>
    %cst_10 = arith.constant dense<0.000000e+00> : vector<8xf32>
    %13 = vector.multi_reduction <add>, %12, %cst_10 [1] : vector<8x256xf32> to vector<8xf32>
    %14 = vector.shape_cast %13 : vector<8xf32> to vector<8x1xf32>
    %15 = arith.addf %8, %14 : vector<8x1xf32>
    %cst_11 = arith.constant dense<0.000000e+00> : vector<8xf32>
    %16 = vector.multi_reduction <add>, %6, %cst_11 [1] : vector<8x256xf32> to vector<8xf32>
    %17 = vector.shape_cast %16 : vector<8xf32> to vector<8x1xf32>
    %18 = arith.addf %11, %17 : vector<8x1xf32>
    %19 = arith.mulf %6, %6 : vector<8x256xf32>
    %cst_12 = arith.constant dense<0.000000e+00> : vector<8xf32>
    %20 = vector.multi_reduction <add>, %19, %cst_12 [1] : vector<8x256xf32> to vector<8xf32>
    %21 = vector.shape_cast %20 : vector<8xf32> to vector<8x1xf32>
    %22 = arith.addf %15, %21 : vector<8x1xf32>
    %cst_13 = arith.constant 5.120000e+02 : f32
    %23 = vector.broadcast %cst_13 : f32 to vector<8x1xf32>
    %24 = arith.divf %18, %23 : vector<8x1xf32>
    %cst_14 = arith.constant 5.120000e+02 : f32
    %25 = vector.broadcast %cst_14 : f32 to vector<8x1xf32>
    %26 = arith.divf %22, %25 : vector<8x1xf32>
    %27 = arith.mulf %24, %24 : vector<8x1xf32>
    %28 = arith.subf %26, %27 : vector<8x1xf32>
    %cst_15 = arith.constant 0.000000e+00 : f32
    %29 = vector.broadcast %cst_15 : f32 to vector<8x1xf32>
    %30 = arith.maximumf %28, %29 : vector<8x1xf32>
    %cst_16 = arith.constant 9.99999974E-6 : f32
    %31 = vector.broadcast %cst_16 : f32 to vector<8x1xf32>
    %32 = arith.addf %30, %31 : vector<8x1xf32>
    %33 = math.rsqrt %32 : vector<8x1xf32>
    %c0_17 = arith.constant 0 : index
    %c0_18 = arith.constant 0 : index
    %34 = vector.load %arg3[%c0_17, %c0_18] : memref<8x1xf32, #tpu.memory_space<vmem>>, vector<8x1xf32>
    %35 = arith.mulf %34, %33 : vector<8x1xf32>
    %c0_19 = arith.constant 0 : index
    %c0_20 = arith.constant 0 : index
    %36 = vector.load %arg4[%c0_19, %c0_20] : memref<8x1xf32, #tpu.memory_space<vmem>>, vector<8x1xf32>
    %37 = arith.mulf %24, %35 : vector<8x1xf32>
    %38 = arith.subf %36, %37 : vector<8x1xf32>
    %39 = vector.broadcast %35 : vector<8x1xf32> to vector<8x256xf32>
    %40 = arith.mulf %3, %39 : vector<8x256xf32>
    %41 = vector.broadcast %38 : vector<8x1xf32> to vector<8x256xf32>
    %42 = arith.addf %40, %41 : vector<8x256xf32>
    %cst_21 = arith.constant 0.000000e+00 : f32
    %43 = vector.broadcast %cst_21 : f32 to vector<8x256xf32>
    %44 = arith.maximumf %42, %43 : vector<8x256xf32>
    %c0_22 = arith.constant 0 : index
    %c0_23 = arith.constant 0 : index
    %c0_24 = arith.constant 0 : index
    %45 = vector.load %arg5[%c0_22, %c0_23, %c0_24] : memref<2x8x256xf32, #tpu.memory_space<vmem>>, vector<1x8x256xf32>
    %46 = vector.shape_cast %45 : vector<1x8x256xf32> to vector<8x256xf32>
    %47 = vector.shape_cast %44 : vector<8x256xf32> to vector<1x8x256xf32>
    tpu.vector_store %arg5[%c0_22, %c0_23, %c0_24], %47 {strides = array<i32>} : memref<2x8x256xf32, #tpu.memory_space<vmem>>, vector<1x8x256xf32>,
    %48 = vector.broadcast %35 : vector<8x1xf32> to vector<8x256xf32>
    %49 = arith.mulf %6, %48 : vector<8x256xf32>
    %50 = vector.broadcast %38 : vector<8x1xf32> to vector<8x256xf32>
    %51 = arith.addf %49, %50 : vector<8x256xf32>
    %cst_25 = arith.constant 0.000000e+00 : f32
    %52 = vector.broadcast %cst_25 : f32 to vector<8x256xf32>
    %53 = arith.maximumf %51, %52 : vector<8x256xf32>
    %c1_26 = arith.constant 1 : index
    %c0_27 = arith.constant 0 : index
    %c0_28 = arith.constant 0 : index
    %54 = vector.load %arg5[%c1_26, %c0_27, %c0_28] : memref<2x8x256xf32, #tpu.memory_space<vmem>>, vector<1x8x256xf32>
    %55 = vector.shape_cast %54 : vector<1x8x256xf32> to vector<8x256xf32>
    %56 = vector.shape_cast %53 : vector<8x256xf32> to vector<1x8x256xf32>
    tpu.vector_store %arg5[%c1_26, %c0_27, %c0_28], %56 {strides = array<i32>} : memref<2x8x256xf32, #tpu.memory_space<vmem>>, vector<1x8x256xf32>,
    return
  }
  func.func @transform_0(%arg0: i32) -> (i32, i32, i32) {
    %c0_i32 = arith.constant 0 : i32
    %c0_i32_0 = arith.constant 0 : i32
    %c0_i32_1 = arith.constant 0 : i32
    %c0_i32_2 = arith.constant 0 : i32
    return %c0_i32, %c0_i32_0, %c0_i32_1 : i32, i32, i32
  }
  func.func @transform_1(%arg0: i32) -> (i32, i32) {
    %c0_i32 = arith.constant 0 : i32
    %c0_i32_0 = arith.constant 0 : i32
    %c0_i32_1 = arith.constant 0 : i32
    return %c0_i32, %c0_i32_0 : i32, i32
  }
  func.func @transform_2(%arg0: i32) -> (i32, i32) {
    %c0_i32 = arith.constant 0 : i32
    %c0_i32_0 = arith.constant 0 : i32
    %c0_i32_1 = arith.constant 0 : i32
    return %c0_i32, %c0_i32_0 : i32, i32
  }
  func.func @transform_3(%arg0: i32) -> (i32, i32) {
    %c0_i32 = arith.constant 0 : i32
    %c0_i32_0 = arith.constant 0 : i32
    %c0_i32_1 = arith.constant 0 : i32
    return %c0_i32, %c0_i32_0 : i32, i32
  }
  func.func @transform_4(%arg0: i32) -> (i32, i32, i32) {
    %c0_i32 = arith.constant 0 : i32
    %c0_i32_0 = arith.constant 0 : i32
    %c0_i32_1 = arith.constant 0 : i32
    %c0_i32_2 = arith.constant 0 : i32
    return %c0_i32, %c0_i32_0, %c0_i32_1 : i32, i32, i32
  }
}

</mosaic_0001>

<bundles_post_ra>
// kernel: two_conv_forward.1
= control target key start
LH: loop header
LB: loop body
LE: loop exit
PB: predicated region body
PF: predicated region fallthrough
CT: control target
= control target key end

     0   :  { %vm25_vm0 = vcmask 1043456   ;;  %v261_v1 = vmov 0.0   ;;  %vm21_vm1 = vcmask 31744   ;;  %v262_v18 = vmov 0   ;;  %s315_s0 = inlined_call_operand.vmem [shape: f32[2,4,256], index: 0, kind: input, shape index: {}]   ;;  %s316_s1 = inlined_call_operand.vmem [shape: f32[8,4], index: 1, kind: input, shape index: {}]   ;;  %s317_s2 = inlined_call_operand.vmem [shape: f32[8,1], index: 2, kind: input, shape index: {}]   ;;  %s318_s3 = inlined_call_operand.vmem [shape: f32[8,1], index: 3, kind: input, shape index: {}]   ;;  %s319_s4 = inlined_call_operand.vmem [shape: f32[2,8,256], index: 4, kind: output, shape index: {}]  }
   0x1   :  { %v18_v0 = vld [vmem:[%s315_s0] sm:$0xff]  ;;  %94 = vmatprep.mubr.f32.mxu0 %v261_v1  ;;  %v247_v2 = vld [vmem:[%s315_s0 + $0x8] sm:$0xff]  ;;  %173 = vmatprep.mubr.f32.mxu1 %v261_v1 }
   0x2   :  { %v20_v3 = vcombine.high %v18_v0, %v18_v0  ;;  %v104_v4 = vcombine.high %v247_v2, %v247_v2  ;;  %v17_v5 = vld [vmem:[%s316_s1] sm:$0xff]  ;;  %255 = vset.pattern.permute.xlu0 %v262_v18  ;;  %256 = vset.pattern.permute.xlu1 %v262_v18 }
   0x3   :  { %v208_v31 = vld [vmem:[%s317_s2] sm:$0xff] }
   0x4   :  { %244 = vmatprep.subr.msk.mxu0 %vm25_vm0, %v20_v3  ;;  %248 = vmatprep.subr.msk.mxu1 %vm25_vm0, %v104_v4  ;;  %v210_v34 = vld [vmem:[%s318_s3] sm:$0xff] }
   0x5   :  { %245 = vmatpush1.msk.msra.mxu0 %vm25_vm0, %v18_v0  ;;  %249 = vmatpush1.msk.msra.mxu1 %vm25_vm0, %v247_v2 }
   0x6   :  { %246 = vmatmul.mubr.msk.f32.vlgmr.msra.gmra.mrb[0].mxu0 %vm21_vm1, %v17_v5  ;;  %250 = vmatmul.mubr.msk.f32.vlgmr.msra.gmra.mrb[0].mxu1 %vm21_vm1, %v17_v5 }
  0xd9   :  { %v96_v6 = vpop.f32.mrb[0].mxu0  ;;  %v175_v7 = vpop.f32.mrb[0].mxu1 }
  0xda   :  { %v98_v8 = vpop.f32.mrb[1].mxu0  ;;  %v177_v9 = vpop.f32.mrb[1].mxu1  ;;  %v184_v10 = vmul.f32 %v96_v6, %v96_v6  ;;  %v194_v11 = vmul.f32 %v175_v7, %v175_v7 }
  0xdb   :  { %v185_v12 = vmul.f32 %v98_v8, %v98_v8  ;;  %v195_v13 = vmul.f32 %v177_v9, %v177_v9  ;;  %v180_v14 = vadd.f32 %v98_v8, %v96_v6  ;;  %v190_v15 = vadd.f32 %v177_v9, %v175_v7 }
  0xdd   :  { %181 = vadd.xlane.f32.xlu0 %v180_v14  ;;  %v186_v16 = vadd.f32 %v185_v12, %v184_v10  ;;  %v196_v17 = vadd.f32 %v195_v13, %v194_v11 }
  0xdf   :  { %187 = vadd.xlane.f32.xlu1 %v186_v16 }
  0xe1   :  { %191 = vadd.xlane.f32.xlu0 %v190_v15 }
  0xe3   :  { %197 = vadd.xlane.f32.xlu1 %v196_v17 }
 0x16a   :  { %v182_v19 = vpop.xlane.xlu0 %181 }
 0x16c   :  { %v188_v20 = vpop.xlane.xlu1 %187 }
 0x16e   :  { %v192_v21 = vpop.xlane.xlu0 %191 }
 0x16f   :  { %v193_v22 = vadd.f32 %v192_v21, %v182_v19 }
 0x170   :  { %v198_v23 = vpop.xlane.xlu1 %197 }
 0x171   :  { %v201_v24 = vmul.f32 0.001953125, %v193_v22  ;;  %v199_v25 = vadd.f32 %v198_v23, %v188_v20 }
 0x173   :  { %v203_v26 = vmul.f32 %v201_v24, %v201_v24  ;;  %v202_v27 = vmul.f32 0.001953125, %v199_v25 }
 0x175   :  { %v204_v28 = vsub.f32 %v202_v27, %v203_v26 }
 0x177   :  { %v205_v29 = vmax.f32 %v204_v28, 0.0 }
 0x179   :  { %v206_v30 = vadd.f32 1e-05, %v205_v29 }
 0x17b   :  { %259 = vrsqrt.f32 %v206_v30 }
 0x185   :  { %v260_v32 = vpop.eup %259 }
 0x186   :  { %v209_v33 = vmul.f32 %v260_v32, %v208_v31 }
 0x188   :  { %215 = vperm.xlu0 %255, %v209_v33   ;;  %v211_v35 = vmul.f32 %v209_v33, %v201_v24 }
 0x18a   :  { %v212_v36 = vsub.f32 %v210_v34, %v211_v35 }
 0x18c   :  { %222 = vperm.xlu1 %256, %v212_v36  }
 0x207   :  { %v216_v37 = vpop.permute.xlu0 %215 }
 0x208   :  { %v218_v38 = vmul.f32 %v216_v37, %v96_v6  ;;  %v219_v39 = vmul.f32 %v216_v37, %v98_v8  ;;  %v231_v40 = vmul.f32 %v216_v37, %v175_v7  ;;  %v232_v41 = vmul.f32 %v216_v37, %v177_v9 }
 0x20b   :  { %v223_v42 = vpop.permute.xlu1 %222 }
 0x20c   :  { %v225_v43 = vadd.f32 %v223_v42, %v218_v38  ;;  %v226_v44 = vadd.f32 %v223_v42, %v219_v39  ;;  %v233_v45 = vadd.f32 %v231_v40, %v223_v42  ;;  %v234_v46 = vadd.f32 %v232_v41, %v223_v42 }
 0x20e   :  { %v227_v47 = vmax.f32 %v225_v43, 0.0  ;;  %v228_v48 = vmax.f32 %v226_v44, 0.0  ;;  %v235_v49 = vmax.f32 %v233_v45, 0.0  ;;  %v236_v50 = vmax.f32 %v234_v46, 0.0 }
 0x210   :  { %229 = vst [vmem:[%s319_s4] sm:$0xff] %v227_v47  ;;  %230 = vst [vmem:[%s319_s4 + $0x8] sm:$0xff] %v228_v48 }
 0x211   :  { %251 = vst [vmem:[%s319_s4 + $0x10] sm:$0xff] %v235_v49  ;;  %252 = vst [vmem:[%s319_s4 + $0x18] sm:$0xff] %v236_v50 }

</bundles_post_ra>
